<compile_context>
chip_gen: v6e
topology: v6e:2x2x1
jax: 0.10.0
libtpu: 0.0.40
codegen_flags: <defaults>
</compile_context>

<pallas_src>
import functools

import jax
import jax.numpy as jnp
from jax.experimental import pallas as pl
from jax.experimental.pallas import tpu as pltpu

_SQRT_HALF = 0.7071067811865476  # 1/sqrt(2)


def _prenorm_ffn_kernel(x_ref, g_ref, beta_ref, w1_ref, b1_ref, w2_ref, b2_ref,
                        o_ref, xn_ref, acc_ref, *, eps):
    # x_ref: (tm, dim)          g_ref/beta_ref: (1, dim)
    # w1_ref: (dim, th)         b1_ref: (1, th)
    # w2_ref: (th, dim)         b2_ref: (1, dim)       o_ref: (tm, dim)
    # xn_ref: (tm, dim) f32     acc_ref: (tm, dim) f32
    k = pl.program_id(1)

    # ---- LayerNorm once per row tile (f32), cache result; zero accumulator ----
    @pl.when(k == 0)
    def _():
        x = x_ref[...].astype(jnp.float32)
        mean = jnp.mean(x, axis=-1, keepdims=True)
        xc = x - mean
        var = jnp.mean(xc * xc, axis=-1, keepdims=True)
        xn = xc * jax.lax.rsqrt(var + eps)
        xn_ref[...] = (xn * g_ref[...].astype(jnp.float32)
                       + beta_ref[...].astype(jnp.float32))
        acc_ref[...] = jnp.zeros_like(acc_ref)

    xn = xn_ref[...]

    # ---- Linear 1 (this hidden chunk): MXU in weight dtype, f32 accumulate ----
    h = jnp.dot(xn.astype(w1_ref.dtype), w1_ref[...],
                preferred_element_type=jnp.float32)
    h = h + b1_ref[...].astype(jnp.float32)

    # ---- exact (erf-based) GELU, matching torch.nn.GELU() default ----
    h = 0.5 * h * (1.0 + jax.lax.erf(h * _SQRT_HALF))

    # Dropout(p=0.0) is the identity (eval semantics) — nothing to do.

    # ---- Linear 2 (this hidden chunk's rows of W2), accumulate over chunks ----
    acc_ref[...] += jnp.dot(h.astype(w2_ref.dtype), w2_ref[...],
                            preferred_element_type=jnp.float32)

    # ---- finalize: add output bias, cast, store ----
    @pl.when(k == pl.num_programs(1) - 1)
    def _():
        o_ref[...] = (acc_ref[...] + b2_ref[...].astype(jnp.float32)).astype(o_ref.dtype)


def _round_up(a, b):
    return (a + b - 1) // b * b


def _pick_hidden_tile(hidden, target=512):
    """Largest 128-multiple divisor of `hidden` that is <= target (else `hidden`)."""
    if hidden <= target or hidden % 128 != 0:
        return hidden
    t = target - target % 128
    for cand in range(t, 127, -128):
        if hidden % cand == 0:
            return cand
    return hidden


@functools.partial(jax.jit, static_argnames=("tm", "eps"))
def prenorm_feed_forward(x, gamma, beta, w1, b1, w2, b2, *, tm=256, eps=1e-5):
    """PreNorm(LayerNorm, FeedForward): x (B, N, dim) -> (B, N, dim)."""
    B, N, dim = x.shape
    hidden = w1.shape[1]
    M = B * N

    # Row tile: as large as requested, 8-aligned, never bigger than (padded) M.
    tm_eff = _round_up(min(tm, _round_up(M, 8)), 8)
    M_pad = _round_up(M, tm_eff)
    th = _pick_hidden_tile(hidden)

    x2d = x.reshape(M, dim)
    if M_pad != M:
        x2d = jnp.pad(x2d, ((0, M_pad - M), (0, 0)))  # padded rows sliced off below

    g2d = gamma.reshape(1, dim)
    be2d = beta.reshape(1, dim)
    b1_2d = b1.reshape(1, hidden)
    b2_2d = b2.reshape(1, dim)

    nbytes = lambda a: a.size * a.dtype.itemsize
    cost = pl.CostEstimate(
        flops=4 * M_pad * dim * hidden + 10 * M_pad * dim,
        transcendentals=M_pad * hidden,
        bytes_accessed=(2 * nbytes(x2d) + nbytes(w1) + nbytes(w2)
                        + nbytes(b1_2d) + nbytes(b2_2d) + nbytes(g2d) + nbytes(be2d)),
    )

    out2d = pl.pallas_call(
        functools.partial(_prenorm_ffn_kernel, eps=eps),
        out_shape=jax.ShapeDtypeStruct((M_pad, dim), x.dtype),
        grid_spec=pltpu.PrefetchScalarGridSpec(
            num_scalar_prefetch=0,
            grid=(M_pad // tm_eff, hidden // th),
            in_specs=[
                pl.BlockSpec((tm_eff, dim), lambda i, k: (i, 0)),   # x tile
                pl.BlockSpec((1, dim), lambda i, k: (0, 0)),        # LayerNorm gamma
                pl.BlockSpec((1, dim), lambda i, k: (0, 0)),        # LayerNorm beta
                pl.BlockSpec((dim, th), lambda i, k: (0, k)),       # W1 hidden chunk
                pl.BlockSpec((1, th), lambda i, k: (0, k)),         # b1 hidden chunk
                pl.BlockSpec((th, dim), lambda i, k: (k, 0)),       # W2 hidden chunk
                pl.BlockSpec((1, dim), lambda i, k: (0, 0)),        # b2
            ],
            out_specs=pl.BlockSpec((tm_eff, dim), lambda i, k: (i, 0)),
            scratch_shapes=[
                pltpu.VMEM((tm_eff, dim), jnp.float32),  # cached LayerNorm output
                pltpu.VMEM((tm_eff, dim), jnp.float32),  # f32 output accumulator
            ],
        ),
        compiler_params=pltpu.CompilerParams(
            dimension_semantics=("parallel", "arbitrary"),
            vmem_limit_bytes=64 * 1024 * 1024,
        ),
        cost_estimate=cost,
    )(x2d, g2d, be2d, w1, b1_2d, w2, b2_2d)

    return out2d[:M].reshape(B, N, dim)


def init_params(key, dim, hidden_dim, dtype=jnp.float32):
    """LayerNorm affine defaults + torch.nn.Linear default init U(-1/sqrt(fan_in), ...)."""
    k1, k2, k3, k4 = jax.random.split(key, 4)
    gamma = jnp.ones((dim,), dtype)
    beta = jnp.zeros((dim,), dtype)
    bound1 = 1.0 / jnp.sqrt(dim)
    bound2 = 1.0 / jnp.sqrt(hidden_dim)
    w1 = jax.random.uniform(k1, (dim, hidden_dim), dtype, -bound1, bound1)
    b1 = jax.random.uniform(k2, (hidden_dim,), dtype, -bound1, bound1)
    w2 = jax.random.uniform(k3, (hidden_dim, dim), dtype, -bound2, bound2)
    b2 = jax.random.uniform(k4, (dim,), dtype, -bound2, bound2)
    return gamma, beta, w1, b1, w2, b2


def _reference(x, gamma, beta, w1, b1, w2, b2, eps=1e-5):
    xf = x.astype(jnp.float32)
    mean = jnp.mean(xf, -1, keepdims=True)
    var = jnp.mean((xf - mean) ** 2, -1, keepdims=True)
    xn = (xf - mean) * jax.lax.rsqrt(var + eps) * gamma + beta
    h = jnp.einsum("bnd,dh->bnh", xn, w1.astype(jnp.float32),
                   precision="highest") + b1
    h = 0.5 * h * (1.0 + jax.lax.erf(h * _SQRT_HALF))
    y = jnp.einsum("bnh,hd->bnd", h, w2.astype(jnp.float32),
                   precision="highest") + b2
    return y.astype(x.dtype)


if __name__ == "__main__":
    # Small but lane-dense shapes: dim/hidden multiples of 128.
    B, N, dim, hidden = 2, 8, 128, 256

    key = jax.random.PRNGKey(0)
    kx, kp = jax.random.split(key)
    x = jax.random.normal(kx, (B, N, dim), jnp.float32)
    gamma, beta, w1, b1, w2, b2 = init_params(kp, dim, hidden, jnp.float32)

    out = prenorm_feed_forward(x, gamma, beta, w1, b1, w2, b2)
    out = jax.block_until_ready(out)

    ref = _reference(x, gamma, beta, w1, b1, w2, b2)
    assert out.shape == (B, N, dim)
    max_err = float(jnp.max(jnp.abs(out - ref)))
    assert jnp.allclose(out, ref, atol=2e-3, rtol=2e-3), f"mismatch vs reference (max err {max_err})"

    print("KERNEL_OK")
</pallas_src>

<mosaic_0001>
module attributes {stable_mosaic.version = 11 : i64} {
  func.func @_prenorm_ffn_kernel(%arg0: i32, %arg1: i32, %arg2: memref<16x128xf32, #tpu.memory_space<vmem>>, %arg3: memref<1x128xf32, #tpu.memory_space<vmem>>, %arg4: memref<1x128xf32, #tpu.memory_space<vmem>>, %arg5: memref<128x256xf32, #tpu.memory_space<vmem>>, %arg6: memref<1x256xf32, #tpu.memory_space<vmem>>, %arg7: memref<256x128xf32, #tpu.memory_space<vmem>>, %arg8: memref<1x128xf32, #tpu.memory_space<vmem>>, %arg9: memref<16x128xf32, #tpu.memory_space<vmem>>, %arg10: memref<16x128xf32, #tpu.memory_space<vmem>>, %arg11: memref<16x128xf32, #tpu.memory_space<vmem>>) attributes {dimension_semantics = [#tpu.dimension_semantics<parallel>, #tpu.dimension_semantics<arbitrary>], iteration_bounds = array<i64: 1, 1>, scalar_prefetch = 0 : i64, scratch_operands = 2 : i64, tpu.core_type = #tpu.core_type<tc>, window_params = [{transform_indices = @transform_0, window_bounds = array<i64: 16, 128>}, {pipeline_mode = #tpu.pipeline_mode<synchronous>, transform_indices = @transform_1, window_bounds = array<i64: 1, 128>}, {pipeline_mode = #tpu.pipeline_mode<synchronous>, transform_indices = @transform_2, window_bounds = array<i64: 1, 128>}, {transform_indices = @transform_3, window_bounds = array<i64: 128, 256>}, {transform_indices = @transform_4, window_bounds = array<i64: 1, 256>}, {transform_indices = @transform_5, window_bounds = array<i64: 256, 128>}, {pipeline_mode = #tpu.pipeline_mode<synchronous>, transform_indices = @transform_6, window_bounds = array<i64: 1, 128>}, {transform_indices = @transform_7, window_bounds = array<i64: 16, 128>}]} {
    %c0_i32 = arith.constant 0 : i32
    %0 = arith.cmpi eq, %arg1, %c0_i32 : i32
    %1 = arith.extui %0 : i1 to i32
    %c0_i32_0 = arith.constant 0 : i32
    %2 = arith.cmpi ne, %1, %c0_i32_0 : i32
    scf.if %2 {
      %c0_18 = arith.constant 0 : index
      %c0_19 = arith.constant 0 : index
      %25 = vector.load %arg2[%c0_18, %c0_19] : memref<16x128xf32, #tpu.memory_space<vmem>>, vector<16x128xf32>
      %cst_20 = arith.constant dense<0.000000e+00> : vector<16xf32>
      %26 = vector.multi_reduction <add>, %25, %cst_20 [1] : vector<16x128xf32> to vector<16xf32>
      %27 = vector.shape_cast %26 : vector<16xf32> to vector<16x1xf32>
      %cst_21 = arith.constant 1.280000e+02 : f32
      %28 = vector.broadcast %cst_21 : f32 to vector<16x1xf32>
      %29 = arith.divf %27, %28 : vector<16x1xf32>
      %30 = vector.broadcast %29 : vector<16x1xf32> to vector<16x128xf32>
      %31 = arith.subf %25, %30 : vector<16x128xf32>
      %32 = arith.mulf %31, %31 : vector<16x128xf32>
      %cst_22 = arith.constant dense<0.000000e+00> : vector<16xf32>
      %33 = vector.multi_reduction <add>, %32, %cst_22 [1] : vector<16x128xf32> to vector<16xf32>
      %34 = vector.shape_cast %33 : vector<16xf32> to vector<16x1xf32>
      %cst_23 = arith.constant 1.280000e+02 : f32
      %35 = vector.broadcast %cst_23 : f32 to vector<16x1xf32>
      %36 = arith.divf %34, %35 : vector<16x1xf32>
      %cst_24 = arith.constant 9.99999974E-6 : f32
      %37 = vector.broadcast %cst_24 : f32 to vector<16x1xf32>
      %38 = arith.addf %36, %37 : vector<16x1xf32>
      %39 = math.rsqrt %38 : vector<16x1xf32>
      %40 = vector.broadcast %39 : vector<16x1xf32> to vector<16x128xf32>
      %41 = arith.mulf %31, %40 : vector<16x128xf32>
      %c0_25 = arith.constant 0 : index
      %c0_26 = arith.constant 0 : index
      %42 = vector.load %arg3[%c0_25, %c0_26] : memref<1x128xf32, #tpu.memory_space<vmem>>, vector<1x128xf32>
      %43 = vector.broadcast %42 : vector<1x128xf32> to vector<16x128xf32>
      %44 = arith.mulf %41, %43 : vector<16x128xf32>
      %c0_27 = arith.constant 0 : index
      %c0_28 = arith.constant 0 : index
      %45 = vector.load %arg4[%c0_27, %c0_28] : memref<1x128xf32, #tpu.memory_space<vmem>>, vector<1x128xf32>
      %46 = vector.broadcast %45 : vector<1x128xf32> to vector<16x128xf32>
      %47 = arith.addf %44, %46 : vector<16x128xf32>
      %c0_29 = arith.constant 0 : index
      %c0_30 = arith.constant 0 : index
      %48 = vector.load %arg10[%c0_29, %c0_30] : memref<16x128xf32, #tpu.memory_space<vmem>>, vector<16x128xf32>
      tpu.vector_store %arg10[%c0_29, %c0_30], %47 {strides = array<i32>} : memref<16x128xf32, #tpu.memory_space<vmem>>, vector<16x128xf32>,
      %cst_31 = arith.constant 0.000000e+00 : f32
      %49 = vector.broadcast %cst_31 : f32 to vector<16x128xf32>
      %c0_32 = arith.constant 0 : index
      %c0_33 = arith.constant 0 : index
      %50 = vector.load %arg11[%c0_32, %c0_33] : memref<16x128xf32, #tpu.memory_space<vmem>>, vector<16x128xf32>
      tpu.vector_store %arg11[%c0_32, %c0_33], %49 {strides = array<i32>} : memref<16x128xf32, #tpu.memory_space<vmem>>, vector<16x128xf32>,
    } else {
    }
    %c0 = arith.constant 0 : index
    %c0_1 = arith.constant 0 : index
    %3 = vector.load %arg10[%c0, %c0_1] : memref<16x128xf32, #tpu.memory_space<vmem>>, vector<16x128xf32>
    %c0_2 = arith.constant 0 : index
    %c0_3 = arith.constant 0 : index
    %4 = vector.load %arg5[%c0_2, %c0_3] : memref<128x256xf32, #tpu.memory_space<vmem>>, vector<128x256xf32>
    %cst = arith.constant dense<0.000000e+00> : vector<16x256xf32>
    %5 = tpu.matmul %3, %4, %cst {dimension_numbers = #tpu.dot_dimension_numbers<[1], [0], [0], [1], [0, 0, 1, 1], [], []>} : vector<16x128xf32>, vector<128x256xf32>, vector<16x256xf32> -> vector<16x256xf32>
    %c0_4 = arith.constant 0 : index
    %c0_5 = arith.constant 0 : index
    %6 = vector.load %arg6[%c0_4, %c0_5] : memref<1x256xf32, #tpu.memory_space<vmem>>, vector<1x256xf32>
    %7 = vector.broadcast %6 : vector<1x256xf32> to vector<16x256xf32>
    %8 = arith.addf %5, %7 : vector<16x256xf32>
    %cst_6 = arith.constant 5.000000e-01 : f32
    %9 = vector.broadcast %cst_6 : f32 to vector<16x256xf32>
    %10 = arith.mulf %9, %8 : vector<16x256xf32>
    %cst_7 = arith.constant 0.707106769 : f32
    %11 = vector.broadcast %cst_7 : f32 to vector<16x256xf32>
    %12 = arith.mulf %8, %11 : vector<16x256xf32>
    %13 = math.erf %12 : vector<16x256xf32>
    %cst_8 = arith.constant 1.000000e+00 : f32
    %14 = vector.broadcast %cst_8 : f32 to vector<16x256xf32>
    %15 = arith.addf %14, %13 : vector<16x256xf32>
    %16 = arith.mulf %10, %15 : vector<16x256xf32>
    %c0_9 = arith.constant 0 : index
    %c0_10 = arith.constant 0 : index
    %17 = vector.load %arg11[%c0_9, %c0_10] : memref<16x128xf32, #tpu.memory_space<vmem>>, vector<16x128xf32>
    %c0_11 = arith.constant 0 : index
    %c0_12 = arith.constant 0 : index
    %18 = vector.load %arg7[%c0_11, %c0_12] : memref<256x128xf32, #tpu.memory_space<vmem>>, vector<256x128xf32>
    %cst_13 = arith.constant dense<0.000000e+00> : vector<16x128xf32>
    %19 = tpu.matmul %16, %18, %cst_13 {dimension_numbers = #tpu.dot_dimension_numbers<[1], [0], [0], [1], [0, 0, 1, 1], [], []>} : vector<16x256xf32>, vector<256x128xf32>, vector<16x128xf32> -> vector<16x128xf32>
    %20 = arith.addf %17, %19 : vector<16x128xf32>
    %c0_14 = arith.constant 0 : index
    %c0_15 = arith.constant 0 : index
    %21 = vector.load %arg11[%c0_14, %c0_15] : memref<16x128xf32, #tpu.memory_space<vmem>>, vector<16x128xf32>
    tpu.vector_store %arg11[%c0_14, %c0_15], %20 {strides = array<i32>} : memref<16x128xf32, #tpu.memory_space<vmem>>, vector<16x128xf32>,
    %c0_i32_16 = arith.constant 0 : i32
    %22 = arith.cmpi eq, %arg1, %c0_i32_16 : i32
    %23 = arith.extui %22 : i1 to i32
    %c0_i32_17 = arith.constant 0 : i32
    %24 = arith.cmpi ne, %23, %c0_i32_17 : i32
    scf.if %24 {
      %c0_18 = arith.constant 0 : index
      %c0_19 = arith.constant 0 : index
      %25 = vector.load %arg11[%c0_18, %c0_19] : memref<16x128xf32, #tpu.memory_space<vmem>>, vector<16x128xf32>
      %c0_20 = arith.constant 0 : index
      %c0_21 = arith.constant 0 : index
      %26 = vector.load %arg8[%c0_20, %c0_21] : memref<1x128xf32, #tpu.memory_space<vmem>>, vector<1x128xf32>
      %27 = vector.broadcast %26 : vector<1x128xf32> to vector<16x128xf32>
      %28 = arith.addf %25, %27 : vector<16x128xf32>
      %c0_22 = arith.constant 0 : index
      %c0_23 = arith.constant 0 : index
      %29 = vector.load %arg9[%c0_22, %c0_23] : memref<16x128xf32, #tpu.memory_space<vmem>>, vector<16x128xf32>
      tpu.vector_store %arg9[%c0_22, %c0_23], %28 {strides = array<i32>} : memref<16x128xf32, #tpu.memory_space<vmem>>, vector<16x128xf32>,
    } else {
    }
    return
  }
  func.func @transform_0(%arg0: i32, %arg1: i32) -> (i32, i32) {
    %c0_i32 = arith.constant 0 : i32
    %c0_i32_0 = arith.constant 0 : i32
    return %arg0, %c0_i32 : i32, i32
  }
  func.func @transform_1(%arg0: i32, %arg1: i32) -> (i32, i32) {
    %c0_i32 = arith.constant 0 : i32
    %c0_i32_0 = arith.constant 0 : i32
    %c0_i32_1 = arith.constant 0 : i32
    return %c0_i32, %c0_i32_0 : i32, i32
  }
  func.func @transform_2(%arg0: i32, %arg1: i32) -> (i32, i32) {
    %c0_i32 = arith.constant 0 : i32
    %c0_i32_0 = arith.constant 0 : i32
    %c0_i32_1 = arith.constant 0 : i32
    return %c0_i32, %c0_i32_0 : i32, i32
  }
  func.func @transform_3(%arg0: i32, %arg1: i32) -> (i32, i32) {
    %c0_i32 = arith.constant 0 : i32
    %c0_i32_0 = arith.constant 0 : i32
    return %c0_i32, %arg1 : i32, i32
  }
  func.func @transform_4(%arg0: i32, %arg1: i32) -> (i32, i32) {
    %c0_i32 = arith.constant 0 : i32
    %c0_i32_0 = arith.constant 0 : i32
    return %c0_i32, %arg1 : i32, i32
  }
  func.func @transform_5(%arg0: i32, %arg1: i32) -> (i32, i32) {
    %c0_i32 = arith.constant 0 : i32
    %c0_i32_0 = arith.constant 0 : i32
    return %arg1, %c0_i32 : i32, i32
  }
  func.func @transform_6(%arg0: i32, %arg1: i32) -> (i32, i32) {
    %c0_i32 = arith.constant 0 : i32
    %c0_i32_0 = arith.constant 0 : i32
    %c0_i32_1 = arith.constant 0 : i32
    return %c0_i32, %c0_i32_0 : i32, i32
  }
  func.func @transform_7(%arg0: i32, %arg1: i32) -> (i32, i32) {
    %c0_i32 = arith.constant 0 : i32
    %c0_i32_0 = arith.constant 0 : i32
    return %arg0, %c0_i32 : i32, i32
  }
}

</mosaic_0001>

<bundles_post_ra>
// kernel: prenorm_feed_forward.1
= control target key start
LH: loop header
LB: loop body
LE: loop exit
PB: predicated region body
PF: predicated region fallthrough
CT: control target
= control target key end

     0   :  { %12 = vsyncpa [#allocation5], 0  ;;  %s649_s0 = inlined_call_operand.hbm [shape: f32[16,128], index: 0, kind: input, shape index: {}]   ;;  %s650_s1 = inlined_call_operand.vmem [shape: f32[1,128], index: 1, kind: input, shape index: {}]   ;;  %s651_s2 = inlined_call_operand.vmem [shape: f32[1,128], index: 2, kind: input, shape index: {}]   ;;  %s652_s3 = inlined_call_operand.hbm [shape: f32[128,256], index: 3, kind: input, shape index: {}]   ;;  %s653_s4 = inlined_call_operand.vmem [shape: f32[1,256], index: 4, kind: input, shape index: {}]   ;;  %s654_s5 = inlined_call_operand.hbm [shape: f32[256,128], index: 5, kind: input, shape index: {}]   ;;  %s655_s6 = inlined_call_operand.vmem [shape: f32[1,128], index: 6, kind: input, shape index: {}]   ;;  %s656_s7 = inlined_call_operand.hbm [shape: f32[16,128], index: 7, kind: output, shape index: {}]  }
   0x1   :  { %13 = vsyncpa [#allocation8], 0 }
   0x2   :  { %14 = vsyncpa [#allocation6], 0  ;;  %s557_s24 = smov [#allocation7]  }
   0x3   :  { %s36_s25 = sshll.u32 %s557_s24, 4  ;;  %s37_s25 = int_to_ptr.vmem [resolvable:$true] %s36_s25 }
   0x4   :  { %s479_s26 = scalar_lea.vmem %s37_s25, 4096  ;;  %p484_p1 = scmp.lt.s32.totalorder %s37_s25, %s37_s25 }
   0x5   :  { %p480_p0 = scmp.ne.s32.totalorder %s37_s25, %s479_s26  ;;  %p485_p2 = scmp.lt.s32.totalorder %s479_s26, %s479_s26 }
   0x7   :  { %p486_p3 = por %p485_p2, %p484_p1 }
   0x9   :  { %p487_p4 = pnand %p486_p3, %p480_p0 }
   0xb   :  { %490 = shalt.err (!%p487_p4)
}
   0xc   :  { %s558_s27 = smov 256   ;;  %s559_s28 = smov 16  }
   0xd   :  { %42 = dma.hbm_to_vmem [thread:$0]  %s652_s3, 4096, %s37_s25, [#allocation8], %s558_s27, %s558_s27, %s559_s28  }
   0xe   :  { %s560_s8 = smov [#allocation4]  }
   0xf   :  { %s20_s9 = sshll.u32 %s560_s8, 4  ;;  %s21_s9 = int_to_ptr.vmem [resolvable:$true] %s20_s9 }
  0x10   :  { %s499_s10 = scalar_lea.vmem %s21_s9, 256  ;;  %p504_p6 = scmp.lt.s32.totalorder %s21_s9, %s21_s9 }
  0x11   :  { %p500_p5 = scmp.ne.s32.totalorder %s21_s9, %s499_s10  ;;  %p505_p7 = scmp.lt.s32.totalorder %s499_s10, %s499_s10 }
  0x13   :  { %p506_p8 = por %p505_p7, %p504_p6 }
  0x15   :  { %p507_p9 = pnand %p506_p8, %p500_p5 }
  0x17   :  { %510 = shalt.err (!%p507_p9)
}
  0x18   :  { %s561_s11 = smov 128   ;;  %s562_s12 = smov 8  }
  0x19   :  { %26 = dma.hbm_to_vmem [thread:$0]  %s649_s0, 256, %s21_s9, [#allocation5], %s561_s11, %s561_s11, %s562_s12  }
  0x1a   :  { %s563_s3 = smov [#allocation9]  }
  0x1b   :  { %s50_s15 = sshll.u32 %s563_s3, 4  ;;  %s51_s15 = int_to_ptr.vmem [resolvable:$true] %s50_s15 }
  0x1c   :  { %s519_s16 = scalar_lea.vmem %s51_s15, 4096  ;;  %p524_p11 = scmp.lt.s32.totalorder %s51_s15, %s51_s15 }
  0x1d   :  { %p520_p10 = scmp.ne.s32.totalorder %s51_s15, %s519_s16  ;;  %p525_p12 = scmp.lt.s32.totalorder %s519_s16, %s519_s16 }
  0x1f   :  { %p526_p13 = por %p525_p12, %p524_p11 }
  0x21   :  { %p527_p0 = pnand %p526_p13, %p520_p10 }
  0x23   :  { %530 = shalt.err (!%p527_p0)
}
  0x24   :  { %56 = dma.hbm_to_vmem [thread:$0]  %s654_s5, 4096, %s51_s15, [#allocation8], %s561_s11, %s561_s11, %s562_s12  }
  0x25   :  { %551 = dma.done.wait [#allocation5], 256  }
  0x26   :  { %552 = vsyncadd [#allocation5], 4294967040 }
  0x27   :  { %553 = dma.done.wait [#allocation8], 8192  }
  0x28   :  { %554 = vsyncadd [#allocation8], 4294959104  ;;  %v72_v0 = vld [vmem:[#allocation4] sm:$0xff]  ;;  %v73_v1 = vld [vmem:[#allocation4 + $0x8] sm:$0xff]  ;;  %v564_v31 = vmov 0.0   ;;  %s565_s22 = smov [#allocation10]  }
  0x29   :  { %74 = vadd.xlane.f32.xlu0 %v72_v0  ;;  %v152_v2 = vld [vmem:[#allocation7 + $0xf8] sm:$0xff]  ;;  %v151_v3 = vld [vmem:[#allocation7 + $0xf0] sm:$0xff]  ;;  %v150_v4 = vld [vmem:[#allocation7 + $0xe8] sm:$0xff]  ;;  %229 = vmatprep.mubr.f32.mxu0 %v564_v31  ;;  %s396_s23 = sshll.u32 %s565_s22, 4  ;;  %s397_s23 = int_to_ptr.vmem [resolvable:$true] %s396_s23 }
  0x2a   :  { %165 = vmatprep.subr.mxu0 %v152_v2  ;;  %v149_v5 = vld [vmem:[#allocation7 + $0xe0] sm:$0xff]  ;;  %v148_v6 = vld [vmem:[#allocation7 + $0xd8] sm:$0xff]  ;;  %v147_v7 = vld [vmem:[#allocation7 + $0xd0] sm:$0xff]  ;;  %s531_s24 = scalar_lea.vmem %s397_s23, 256  ;;  %p536_p2 = scmp.lt.s32.totalorder %s397_s23, %s397_s23 }
  0x2b   :  { %166 = vmatpush1.msra.mxu0 %v151_v3  ;;  %v146_v8 = vld [vmem:[#allocation7 + $0xc8] sm:$0xff]  ;;  %v145_v9 = vld [vmem:[#allocation7 + $0xc0] sm:$0xff]  ;;  %v144_v18 = vld [vmem:[#allocation7 + $0xb8] sm:$0xff]  ;;  %p532_p1 = scmp.ne.s32.totalorder %s397_s23, %s531_s24  ;;  %p537_p3 = scmp.lt.s32.totalorder %s531_s24, %s531_s24 }
  0x2c   :  { %167 = vmatprep.subr.mxu0 %v150_v4  ;;  %v143_v19 = vld [vmem:[#allocation7 + $0xb0] sm:$0xff]  ;;  %v142_v20 = vld [vmem:[#allocation7 + $0xa8] sm:$0xff]  ;;  %v141_v21 = vld [vmem:[#allocation7 + $0xa0] sm:$0xff] }
  0x2d   :  { %76 = vadd.xlane.f32.xlu0 %v73_v1  ;;  %168 = vmatpush1.msra.mxu0 %v149_v5  ;;  %v140_v22 = vld [vmem:[#allocation7 + $0x98] sm:$0xff]  ;;  %v139_v23 = vld [vmem:[#allocation7 + $0x90] sm:$0xff]  ;;  %v138_v24 = vld [vmem:[#allocation7 + $0x88] sm:$0xff]  ;;  %p538_p4 = por %p537_p3, %p536_p2 }
  0x2e   :  { %169 = vmatprep.subr.mxu0 %v148_v6  ;;  %v137_v25 = vld [vmem:[#allocation7 + $0x80] sm:$0xff]  ;;  %v136_v26 = vld [vmem:[#allocation7 + $0x78] sm:$0xff]  ;;  %v135_v27 = vld [vmem:[#allocation7 + $0x70] sm:$0xff] }
  0x2f   :  { %170 = vmatpush1.msra.mxu0 %v147_v7  ;;  %v134_v28 = vld [vmem:[#allocation7 + $0x68] sm:$0xff]  ;;  %v133_v29 = vld [vmem:[#allocation7 + $0x60] sm:$0xff]  ;;  %v132_v30 = vld [vmem:[#allocation7 + $0x58] sm:$0xff]  ;;  %p539_p5 = pnand %p538_p4, %p532_p1 }
  0x30   :  { %171 = vmatprep.subr.mxu0 %v146_v8  ;;  %v131_v32 = vld [vmem:[#allocation7 + $0x50] sm:$0xff]  ;;  %v130_v33 = vld [vmem:[#allocation7 + $0x48] sm:$0xff]  ;;  %v129_v34 = vld [vmem:[#allocation7 + $0x40] sm:$0xff] }
  0x31   :  { %172 = vmatpush1.msra.mxu0 %v145_v9  ;;  %v128_v35 = vld [vmem:[#allocation7 + $0x38] sm:$0xff]  ;;  %v127_v36 = vld [vmem:[#allocation7 + $0x30] sm:$0xff]  ;;  %v126_v37 = vld [vmem:[#allocation7 + $0x28] sm:$0xff] }
  0x32   :  { %173 = vmatprep.subr.mxu0 %v144_v18  ;;  %v125_v38 = vld [vmem:[#allocation7 + $0x20] sm:$0xff]  ;;  %v124_v39 = vld [vmem:[#allocation7 + $0x18] sm:$0xff]  ;;  %v123_v40 = vld [vmem:[#allocation7 + $0x10] sm:$0xff] }
  0x33   :  { %174 = vmatpush1.msra.mxu0 %v143_v19  ;;  %v122_v41 = vld [vmem:[#allocation7 + $0x8] sm:$0xff]  ;;  %v121_v42 = vld [vmem:[#allocation7] sm:$0xff]  ;;  %v295_v43 = vld [vmem:[#allocation9 + $0xf8] sm:$0xff] }
  0x34   :  { %175 = vmatprep.subr.mxu0 %v142_v20  ;;  %v279_v44 = vld [vmem:[#allocation9 + $0x78] sm:$0xff]  ;;  %v294_v45 = vld [vmem:[#allocation9 + $0xf0] sm:$0xff]  ;;  %412 = vmatprep.subr.mxu1 %v295_v43  ;;  %v293_v47 = vld [vmem:[#allocation9 + $0xe8] sm:$0xff] }
  0x35   :  { %176 = vmatpush1.msra.mxu0 %v141_v21  ;;  %v278_v46 = vld [vmem:[#allocation9 + $0x70] sm:$0xff]  ;;  %413 = vmatpush3.msra.mxu1 %v279_v44  ;;  %v277_v48 = vld [vmem:[#allocation9 + $0x68] sm:$0xff]  ;;  %v276_v2 = vld [vmem:[#allocation9 + $0x60] sm:$0xff] }
  0x36   :  { %177 = vmatprep.subr.mxu0 %v140_v22  ;;  %414 = vmatprep.subr.mxu1 %v294_v45  ;;  %v409_v56 = vld [vmem:[%s650_s1] ss:$0 sm:$0xff]  ;;  %v291_v3 = vld [vmem:[#allocation9 + $0xd8] sm:$0xff]  ;;  %v289_v7 = vld [vmem:[#allocation9 + $0xc8] sm:$0xff] }
  0x37   :  { %178 = vmatpush1.msra.mxu0 %v139_v23  ;;  %415 = vmatpush3.msra.mxu1 %v278_v46  ;;  %v410_v58 = vld [vmem:[%s651_s2] ss:$0 sm:$0xff]  ;;  %v275_v4 = vld [vmem:[#allocation9 + $0x58] sm:$0xff]  ;;  %v273_v8 = vld [vmem:[#allocation9 + $0x48] sm:$0xff] }
  0x38   :  { %179 = vmatprep.subr.mxu0 %v138_v24  ;;  %416 = vmatprep.subr.mxu1 %v293_v47  ;;  %v290_v5 = vld [vmem:[#allocation9 + $0xd0] sm:$0xff]  ;;  %v288_v9 = vld [vmem:[#allocation9 + $0xc0] sm:$0xff]  ;;  %v283_v19 = vld [vmem:[#allocation9 + $0x98] sm:$0xff] }
  0x39   :  { %180 = vmatpush1.msra.mxu0 %v137_v25  ;;  %417 = vmatpush3.msra.mxu1 %v277_v48  ;;  %v274_v6 = vld [vmem:[#allocation9 + $0x50] sm:$0xff]  ;;  %v268_v18 = vld [vmem:[#allocation9 + $0x20] sm:$0xff]  ;;  %v267_v20 = vld [vmem:[#allocation9 + $0x18] sm:$0xff] }
  0x3a   :  { %181 = vmatprep.subr.mxu0 %v136_v26  ;;  %v282_v21 = vld [vmem:[#allocation9 + $0x90] sm:$0xff]  ;;  %v281_v23 = vld [vmem:[#allocation9 + $0x88] sm:$0xff]  ;;  %v280_v25 = vld [vmem:[#allocation9 + $0x80] sm:$0xff] }
  0x3b   :  { %182 = vmatpush1.msra.mxu0 %v135_v27  ;;  %v266_v22 = vld [vmem:[#allocation9 + $0x10] sm:$0xff]  ;;  %v265_v24 = vld [vmem:[#allocation9 + $0x8] sm:$0xff]  ;;  %v264_v26 = vld [vmem:[#allocation9] sm:$0xff]  ;;  %v155_v27 = vlaneseq }
  0x3c   :  { %183 = vmatprep.subr.mxu0 %v134_v28 }
  0x3d   :  { %184 = vmatpush1.msra.mxu0 %v133_v29  ;;  %v156_v28 = vshrl.u32 %v155_v27, 7 }
  0x3e   :  { %185 = vmatprep.subr.mxu0 %v132_v30  ;;  %v153_v30 = vld [vmem:[%s653_s4] sm:$0x3] }
  0x3f   :  { %186 = vmatpush1.msra.mxu0 %v131_v32  ;;  %v157_v29 = vsub.s32 0, %v156_v28 }
  0x40   :  { %187 = vmatprep.subr.mxu0 %v130_v33 }
  0x41   :  { %188 = vmatpush1.msra.mxu0 %v129_v34  ;;  %v158_v32 = vrot.slane %v153_v30, %v157_v29 }
  0x42   :  { %189 = vmatprep.subr.mxu0 %v128_v35 }
  0x43   :  { %190 = vmatpush1.msra.mxu0 %v127_v36 }
  0x44   :  { %191 = vmatprep.subr.mxu0 %v126_v37 }
  0x45   :  { %192 = vmatpush1.msra.mxu0 %v125_v38 }
  0x46   :  { %193 = vmatprep.subr.mxu0 %v124_v39 }
  0x47   :  { %194 = vmatpush1.msra.mxu0 %v123_v40 }
  0x48   :  { %195 = vmatprep.subr.mxu0 %v122_v41 }
  0x49   :  { %196 = vmatpush1.msra.mxu0 %v121_v42 }
  0xb2   :  { %v75_v10 = vpop.xlane.xlu0 %74 }
  0xb3   :  { %v79_v11 = vmul.f32 0.0078125, %v75_v10  ;;  %v272_v10 = vld [vmem:[#allocation9 + $0x40] sm:$0xff] }
  0xb5   :  { %v621_v12 = vsub.f32 %v72_v0, %v79_v11  ;;  %v287_v11 = vld [vmem:[#allocation9 + $0xb8] sm:$0xff] }
  0xb6   :  { %v77_v13 = vpop.xlane.xlu0 %76 }
  0xb7   :  { %v80_v14 = vmul.f32 0.0078125, %v77_v13  ;;  %v83_v15 = vmul.f32 %v621_v12, %v621_v12  ;;  %v286_v13 = vld [vmem:[#allocation9 + $0xb0] sm:$0xff] }
  0xb9   :  { %v625_v16 = vsub.f32 %v73_v1, %v80_v14  ;;  %85 = vadd.xlane.f32.xlu1 %v83_v15  ;;  %v292_v1 = vld [vmem:[#allocation9 + $0xe0] sm:$0xff]  ;;  %v270_v14 = vld [vmem:[#allocation9 + $0x30] sm:$0xff]  ;;  %v285_v15 = vld [vmem:[#allocation9 + $0xa8] sm:$0xff] }
  0xba   :  { %418 = vmatprep.subr.mxu1 %v292_v1 }
  0xbb   :  { %v84_v17 = vmul.f32 %v625_v16, %v625_v16  ;;  %419 = vmatpush3.msra.mxu1 %v276_v2 }
  0xbc   :  { %420 = vmatprep.subr.mxu1 %v291_v3 }
  0xbd   :  { %87 = vadd.xlane.f32.xlu1 %v84_v17  ;;  %421 = vmatpush3.msra.mxu1 %v275_v4  ;;  %v284_v17 = vld [vmem:[#allocation9 + $0xa0] sm:$0xff] }
  0xbe   :  { %422 = vmatprep.subr.mxu1 %v290_v5 }
  0xbf   :  { %423 = vmatpush3.msra.mxu1 %v274_v6 }
  0xc0   :  { %424 = vmatprep.subr.mxu1 %v289_v7 }
  0xc1   :  { %425 = vmatpush3.msra.mxu1 %v273_v8 }
  0xc2   :  { %426 = vmatprep.subr.mxu1 %v288_v9 }
  0xc3   :  { %427 = vmatpush3.msra.mxu1 %v272_v10 }
  0xc4   :  { %428 = vmatprep.subr.mxu1 %v287_v11 }
 0x142   :  { %v86_v49 = vpop.xlane.xlu1 %85 }
 0x143   :  { %v89_v50 = vmul.f32 0.0078125, %v86_v49 }
 0x145   :  { %v91_v51 = vadd.f32 1e-05, %v89_v50 }
 0x146   :  { %v88_v52 = vpop.xlane.xlu1 %87 }
 0x147   :  { %459 = vrsqrt.f32 %v91_v51  ;;  %v90_v53 = vmul.f32 0.0078125, %v88_v52 }
 0x149   :  { %v92_v54 = vadd.f32 1e-05, %v90_v53 }
 0x14b   :  { %461 = vrsqrt.f32 %v92_v54 }
 0x154   :  { %v460_v55 = vpop.eup %459 }
 0x155   :  { %v95_v57 = vmul.f32 %v460_v55, %v621_v12  ;;  %v271_v12 = vld [vmem:[#allocation9 + $0x38] sm:$0xff] }
 0x156   :  { %429 = vmatpush3.msra.mxu1 %v271_v12 }
 0x157   :  { %v104_v59 = vmul.f32 %v409_v56, %v95_v57  ;;  %430 = vmatprep.subr.mxu1 %v286_v13 }
 0x158   :  { %v462_v60 = vpop.eup %461  ;;  %431 = vmatpush3.msra.mxu1 %v270_v14 }
 0x159   :  { %v113_v61 = vadd.f32 %v410_v58, %v104_v59  ;;  %v96_v62 = vmul.f32 %v462_v60, %v625_v16  ;;  %v269_v16 = vld [vmem:[#allocation9 + $0x28] sm:$0xff]  ;;  %432 = vmatprep.subr.mxu1 %v285_v15 }
 0x15a   :  { %433 = vmatpush3.msra.mxu1 %v269_v16 }
 0x15b   :  { %230 = vmatmul.mubr.f32.vlgmr.msra.gmra.mxu0 %v113_v61  ;;  %v105_v63 = vmul.f32 %v409_v56, %v96_v62  ;;  %434 = vmatprep.subr.mxu1 %v284_v17 }
 0x15c   :  { %235 = vmatprep.mubr.f32.mxu0 %v564_v31  ;;  %435 = vmatpush3.msra.mxu1 %v268_v18  ;;  %v161_v31 = vsub.s32 1, %v156_v28 }
 0x15d   :  { %v114_v0 = vadd.f32 %v410_v58, %v105_v63  ;;  %436 = vmatprep.subr.mxu1 %v283_v19 }
 0x15e   :  { %437 = vmatpush3.msra.mxu1 %v267_v20  ;;  %v162_v33 = vrot.slane %v153_v30, %v161_v31 }
 0x15f   :  { %236 = vmatmul.mubr.f32.gmra.mxu0 %v114_v0  ;;  %438 = vmatprep.subr.mxu1 %v282_v21  ;;  %v411_v0 = vld [vmem:[%s655_s6] ss:$0 sm:$0xff] }
 0x160   :  { %439 = vmatpush3.msra.mxu1 %v266_v22 }
 0x161   :  { %440 = vmatprep.subr.mxu1 %v281_v23 }
 0x162   :  { %441 = vmatpush3.msra.mxu1 %v265_v24 }
 0x163   :  { %442 = vmatprep.subr.mxu1 %v280_v25 }
 0x164   :  { %443 = vmatpush3.msra.mxu1 %v264_v26 }
 0x21b   :  { %v231_v34 = vpop.f32.mrf.mxu0 }
 0x21c   :  { %v232_v35 = vadd.f32 %v231_v34, %v158_v32 }
 0x21d   :  { %v233_v36 = vpop.f32.mrf.mxu0 }
 0x21e   :  { %v246_v37 = vmul.f32 0.70710677, %v232_v35  ;;  %v234_v38 = vadd.f32 %v233_v36, %v162_v33  ;;  %v242_v52 = vmul.f32 0.5, %v232_v35 }
 0x21f   :  { %v237_v39 = vpop.f32.mrf.mxu0 }
 0x220   :  { %463 = verf.f32 %v246_v37  ;;  %v247_v40 = vmul.f32 0.70710677, %v234_v38  ;;  %v238_v41 = vadd.f32 %v237_v39, %v158_v32  ;;  %v243_v49 = vmul.f32 0.5, %v234_v38 }
 0x221   :  { %v239_v42 = vpop.f32.mrf.mxu0 }
 0x222   :  { %465 = verf.f32 %v247_v40  ;;  %v248_v43 = vmul.f32 0.70710677, %v238_v41  ;;  %v240_v44 = vadd.f32 %v239_v42, %v162_v33  ;;  %v244_v59 = vmul.f32 0.5, %v238_v41 }
 0x224   :  { %467 = verf.f32 %v248_v43  ;;  %v249_v45 = vmul.f32 0.70710677, %v240_v44  ;;  %v245_v57 = vmul.f32 0.5, %v240_v44 }
 0x226   :  { %469 = verf.f32 %v249_v45 }
 0x22d   :  { %v464_v46 = vpop.eup %463 }
 0x22e   :  { %v254_v48 = vadd.f32 1.0, %v464_v46 }
 0x22f   :  { %v466_v47 = vpop.eup %465 }
 0x230   :  { %v255_v50 = vadd.f32 1.0, %v466_v47  ;;  %v258_v55 = vmul.f32 %v254_v48, %v242_v52 }
 0x231   :  { %v468_v51 = vpop.eup %467 }
 0x232   :  { %v259_v53 = vmul.f32 %v255_v50, %v243_v49  ;;  %v256_v56 = vadd.f32 1.0, %v468_v51 }
 0x233   :  { %v470_v54 = vpop.eup %469 }
 0x234   :  { %360 = vmatprep.mubr.f32.mxu1 %v259_v53  ;;  %v257_v58 = vadd.f32 1.0, %v470_v54  ;;  %v260_v61 = vmul.f32 %v256_v56, %v244_v59 }
 0x235   :  { %361 = vmatmul.mubr.f32.vlgmr.msra.gmra.mxu1 %v258_v55 }
 0x236   :  { %v261_v60 = vmul.f32 %v257_v58, %v245_v57 }
 0x238   :  { %365 = vmatprep.mubr.f32.mxu1 %v261_v60 }
 0x239   :  { %366 = vmatmul.mubr.f32.gmra.mxu1 %v260_v61 }
 0x2f5   :  { %v444_v62 = vpop.f32.mrf.mxu1 }
 0x2f7   :  { %v445_v63 = vpop.f32.mrf.mxu1 }
 0x2f8   :  { %v446_v1 = vadd.f32 %v445_v63, %v444_v62 }
 0x2f9   :  { %v447_v2 = vpop.f32.mrf.mxu1 }
 0x2fa   :  { %v387_v3 = vadd.f32 %v446_v1, %v411_v0 }
 0x2fb   :  { %v448_v4 = vpop.f32.mrf.mxu1 }
 0x2fc   :  { %389 = vst [vmem:[#allocation10] sm:$0xff] %v387_v3  ;;  %v449_v5 = vadd.f32 %v448_v4, %v447_v2 }
 0x2fe   :  { %v388_v6 = vadd.f32 %v449_v5, %v411_v0 }
 0x300   :  { %390 = vst [vmem:[#allocation10 + $0x8] sm:$0xff] %v388_v6 }
 0x301   :  { %542 = shalt.err (!%p539_p5)
}
 0x302   :  { %402 = dma.vmem_to_hbm [thread:$0]  %s397_s23, 256, %s656_s7, [#allocation6], %s561_s11, %s561_s11, %s562_s12  }
 0x303   :  { %555 = dma.done.wait [#allocation6], 256  }
 0x304   :  { %556 = vsyncadd [#allocation6], 4294967040 }
 0x305   :  { %406 = vsyncpa [#allocation5], 1 }
 0x306   :  { %407 = vsyncpa [#allocation8], 1 }
 0x307   :  { %408 = vsyncpa [#allocation6], 1 }

</bundles_post_ra>
